<compile_context>
chip_gen: v6e
topology: v6e:2x2x1
jax: 0.10.0
libtpu: 0.0.40
codegen_flags: <defaults>
</compile_context>

<pallas_src>
import jax
import jax.numpy as jnp
from jax.experimental import pallas as pl
from jax.experimental.pallas import tpu as pltpu

REGION_EMB = 64
LOC_EMB = 64
USER_EMB = REGION_EMB + LOC_EMB   # 128 (lane-tile aligned)
NEG_SLOPE = 0.01                  # torch.nn.LeakyReLU default


def _price_kernel(xu_ref, xl_ref, xr_ref, wu_ref, wl_ref, wr_ref,
                  bu_ref, blr_ref, bias_ref, out_ref):
    f32 = jnp.float32

    # User branch: [bt, user_dim] @ [user_dim, 128]  (MXU, f32 accumulate)
    zu = jnp.dot(xu_ref[...], wu_ref[...], preferred_element_type=f32) + bu_ref[...]
    u = jnp.maximum(zu, NEG_SLOPE * zu)            # LeakyReLU == max(x, a*x), a < 1

    # Loc | Region branch: two MXU matmuls whose weights are zero-padded into
    # disjoint 64-lane halves of the same 128-lane tile (no in-kernel concat).
    # The region weight already contains the mean-over-K (tile(Wr, K) / K).
    zlr = (jnp.dot(xl_ref[...], wl_ref[...], preferred_element_type=f32)
           + jnp.dot(xr_ref[...], wr_ref[...], preferred_element_type=f32)
           + blr_ref[...])
    lr_act = jnp.maximum(zlr, NEG_SLOPE * zlr)
    col = jax.lax.broadcasted_iota(jnp.int32, (1, USER_EMB), 1)   # constant mask
    lr = jnp.where(col < LOC_EMB, lr_act, zlr)     # region half stays linear

    # price[b] = <u[b,:], lr[b,:]>  -- 128-lane reduce rides the idle XLU slot.
    price = jnp.sum(u * lr, axis=1, keepdims=True)
    out_ref[...] = (price + bias_ref[0, 0]).astype(out_ref.dtype)


def mi_price_regression_v2_forward(feat_user, feat_loc, feat_region, params,
                                    *, block_b=1024):
    assert block_b % 8 == 0
    B, user_dim = feat_user.shape
    loc_dim = feat_loc.shape[1]
    K, region_dim = feat_region.shape[1], feat_region.shape[2]
    krd = K * region_dim

    # Row-major reshape: free (no data movement).
    xr = feat_region.reshape(B, krd)

    # --- Lane-aligned weights (built once per call, tiny, resident in VMEM).
    wu = params['wu'].astype(jnp.float32)                              # [user_dim, 128]
    wl_wide = jnp.zeros((loc_dim, USER_EMB), jnp.float32)
    wl_wide = wl_wide.at[:, :LOC_EMB].set(params['wl'])                # loc -> cols 0:64
    # mean_k(x_k @ Wr) == x_flat @ (vstack_K(Wr) / K): mean folded into weight.
    wr_rep = jnp.tile(params['wr'], (K, 1)) / K                        # [K*rd, 64]
    wr_wide = jnp.zeros((krd, USER_EMB), jnp.float32)
    wr_wide = wr_wide.at[:, LOC_EMB:].set(wr_rep)                      # region -> cols 64:128
    bu = params['bu'].astype(jnp.float32)                              # [1, 128]
    blr = jnp.concatenate([params['bl'], params['br']], axis=1).astype(jnp.float32)
    bias = params['bias'].reshape(1, 1).astype(jnp.float32)            # scalar -> SMEM

    # --- Batch tiling: one block if it fits, otherwise ragged 1-D grid
    # (Pallas masks out-of-bounds writeback; rows are independent).
    bt = B if B <= block_b else block_b
    grid = (pl.cdiv(B, bt),)

    out = pl.pallas_call(
        _price_kernel,
        out_shape=jax.ShapeDtypeStruct((B, 1), jnp.float32),
        grid=grid,
        in_specs=[
            # Activations: tiled over batch, pipelined HBM<->VMEM.
            pl.BlockSpec((bt, user_dim), lambda i: (i, 0)),
            pl.BlockSpec((bt, loc_dim), lambda i: (i, 0)),
            pl.BlockSpec((bt, krd), lambda i: (i, 0)),
            # Weights / bias rows: same block every step -> DMA'd once, resident.
            pl.BlockSpec((user_dim, USER_EMB), lambda i: (0, 0)),
            pl.BlockSpec((loc_dim, USER_EMB), lambda i: (0, 0)),
            pl.BlockSpec((krd, USER_EMB), lambda i: (0, 0)),
            pl.BlockSpec((1, USER_EMB), lambda i: (0, 0)),
            pl.BlockSpec((1, USER_EMB), lambda i: (0, 0)),
            # Scalar output bias: SMEM (scalar-slot read, no padded vreg).
            pl.BlockSpec(memory_space=pltpu.MemorySpace.SMEM),
        ],
        out_specs=pl.BlockSpec((bt, 1), lambda i: (i, 0)),
        compiler_params=pltpu.CompilerParams(
            dimension_semantics=("parallel",)),
    )(feat_user, feat_loc, xr, wu, wl_wide, wr_wide, bu, blr, bias)
    return out


def init_params(key, user_dim, loc_dim, region_dim):
    """Deterministic init mirroring nn.Linear's U(-1/sqrt(fin), 1/sqrt(fin))."""
    ks = jax.random.split(key, 4)

    def lin(k, fin, fout):
        bound = 1.0 / float(fin) ** 0.5
        kw, kb = jax.random.split(k)
        w = jax.random.uniform(kw, (fin, fout), jnp.float32, -bound, bound)
        b = jax.random.uniform(kb, (1, fout), jnp.float32, -bound, bound)
        return w, b

    wu, bu = lin(ks[0], user_dim, USER_EMB)
    wl, bl = lin(ks[1], loc_dim, LOC_EMB)
    wr, br = lin(ks[2], region_dim, REGION_EMB)
    bias = jax.random.uniform(ks[3], (1, 1), jnp.float32, -0.1, 0.1)
    return dict(wu=wu, bu=bu, wl=wl, bl=bl, wr=wr, br=br, bias=bias)


def _leaky_relu(x):
    return jnp.where(x >= 0, x, NEG_SLOPE * x)


def reference_forward(feat_user, feat_loc, feat_region, params):
    """Pure-JAX reference for validation (mirrors the PyTorch forward)."""
    user_emb = _leaky_relu(feat_user @ params['wu'] + params['bu'])
    loc_emb = _leaky_relu(feat_loc @ params['wl'] + params['bl'])
    # TODO(synk): setLinearLayer_fast is undefined in the provided source;
    # modeled as a per-element Linear followed by mean pooling over K.
    region_emb = jnp.mean(
        jnp.einsum('bkd,de->bke', feat_region, params['wr']) + params['br'],
        axis=1)
    lr = jnp.concatenate([loc_emb, region_emb], axis=1)
    return jnp.sum(user_emb * lr, axis=1, keepdims=True) + params['bias'][0, 0]


if __name__ == "__main__":
    B, K = 8, 4
    user_dim, loc_dim, region_dim = 32, 24, 16

    key = jax.random.PRNGKey(0)
    k_u, k_l, k_r, k_p = jax.random.split(key, 4)

    feat_user = jax.random.normal(k_u, (B, user_dim), jnp.float32)
    feat_loc = jax.random.normal(k_l, (B, loc_dim), jnp.float32)
    feat_region = jax.random.normal(k_r, (B, K, region_dim), jnp.float32)
    params = init_params(k_p, user_dim, loc_dim, region_dim)

    fwd = jax.jit(mi_price_regression_v2_forward)
    out = jax.block_until_ready(fwd(feat_user, feat_loc, feat_region, params))

    ref = reference_forward(feat_user, feat_loc, feat_region, params)
    assert out.shape == (B, 1)
    assert jnp.allclose(out, ref, atol=1e-4, rtol=1e-4)

    print("KERNEL_OK")
</pallas_src>

<mosaic_0001>
module attributes {stable_mosaic.version = 11 : i64} {
  func.func @_price_kernel(%arg0: i32, %arg1: memref<8x32xf32, #tpu.memory_space<vmem>>, %arg2: memref<8x24xf32, #tpu.memory_space<vmem>>, %arg3: memref<8x64xf32, #tpu.memory_space<vmem>>, %arg4: memref<32x128xf32, #tpu.memory_space<vmem>>, %arg5: memref<24x128xf32, #tpu.memory_space<vmem>>, %arg6: memref<64x128xf32, #tpu.memory_space<vmem>>, %arg7: memref<1x128xf32, #tpu.memory_space<vmem>>, %arg8: memref<1x128xf32, #tpu.memory_space<vmem>>, %arg9: memref<1x1xf32, #tpu.memory_space<smem>>, %arg10: memref<8x1xf32, #tpu.memory_space<vmem>>) attributes {dimension_semantics = [#tpu.dimension_semantics<parallel>], iteration_bounds = array<i64: 1>, scalar_prefetch = 0 : i64, scratch_operands = 0 : i64, tpu.core_type = #tpu.core_type<tc>, window_params = [{transform_indices = @transform_0, window_bounds = array<i64: 8, 32>}, {transform_indices = @transform_1, window_bounds = array<i64: 8, 24>}, {transform_indices = @transform_2, window_bounds = array<i64: 8, 64>}, {pipeline_mode = #tpu.pipeline_mode<synchronous>, transform_indices = @transform_3, window_bounds = array<i64: 32, 128>}, {pipeline_mode = #tpu.pipeline_mode<synchronous>, transform_indices = @transform_4, window_bounds = array<i64: 24, 128>}, {pipeline_mode = #tpu.pipeline_mode<synchronous>, transform_indices = @transform_5, window_bounds = array<i64: 64, 128>}, {pipeline_mode = #tpu.pipeline_mode<synchronous>, transform_indices = @transform_6, window_bounds = array<i64: 1, 128>}, {pipeline_mode = #tpu.pipeline_mode<synchronous>, transform_indices = @transform_7, window_bounds = array<i64: 1, 128>}, {transform_indices = @transform_8, window_bounds = array<i64: 1, 1>}, {transform_indices = @transform_9, window_bounds = array<i64: 8, 1>}]} {
    %c0 = arith.constant 0 : index
    %c0_0 = arith.constant 0 : index
    %0 = vector.load %arg1[%c0, %c0_0] : memref<8x32xf32, #tpu.memory_space<vmem>>, vector<8x32xf32>
    %c0_1 = arith.constant 0 : index
    %c0_2 = arith.constant 0 : index
    %1 = vector.load %arg4[%c0_1, %c0_2] : memref<32x128xf32, #tpu.memory_space<vmem>>, vector<32x128xf32>
    %cst = arith.constant dense<0.000000e+00> : vector<8x128xf32>
    %2 = tpu.matmul %0, %1, %cst {dimension_numbers = #tpu.dot_dimension_numbers<[1], [0], [0], [1], [0, 0, 1, 1], [], []>} : vector<8x32xf32>, vector<32x128xf32>, vector<8x128xf32> -> vector<8x128xf32>
    %c0_3 = arith.constant 0 : index
    %c0_4 = arith.constant 0 : index
    %3 = vector.load %arg7[%c0_3, %c0_4] : memref<1x128xf32, #tpu.memory_space<vmem>>, vector<1x128xf32>
    %4 = vector.broadcast %3 : vector<1x128xf32> to vector<8x128xf32>
    %5 = arith.addf %2, %4 : vector<8x128xf32>
    %cst_5 = arith.constant 0.00999999977 : f32
    %6 = vector.broadcast %cst_5 : f32 to vector<8x128xf32>
    %7 = arith.mulf %6, %5 : vector<8x128xf32>
    %8 = arith.maximumf %5, %7 : vector<8x128xf32>
    %c0_6 = arith.constant 0 : index
    %c0_7 = arith.constant 0 : index
    %9 = vector.load %arg2[%c0_6, %c0_7] : memref<8x24xf32, #tpu.memory_space<vmem>>, vector<8x24xf32>
    %c0_8 = arith.constant 0 : index
    %c0_9 = arith.constant 0 : index
    %10 = vector.load %arg5[%c0_8, %c0_9] : memref<24x128xf32, #tpu.memory_space<vmem>>, vector<24x128xf32>
    %cst_10 = arith.constant dense<0.000000e+00> : vector<8x128xf32>
    %11 = tpu.matmul %9, %10, %cst_10 {dimension_numbers = #tpu.dot_dimension_numbers<[1], [0], [0], [1], [0, 0, 1, 1], [], []>} : vector<8x24xf32>, vector<24x128xf32>, vector<8x128xf32> -> vector<8x128xf32>
    %c0_11 = arith.constant 0 : index
    %c0_12 = arith.constant 0 : index
    %12 = vector.load %arg3[%c0_11, %c0_12] : memref<8x64xf32, #tpu.memory_space<vmem>>, vector<8x64xf32>
    %c0_13 = arith.constant 0 : index
    %c0_14 = arith.constant 0 : index
    %13 = vector.load %arg6[%c0_13, %c0_14] : memref<64x128xf32, #tpu.memory_space<vmem>>, vector<64x128xf32>
    %cst_15 = arith.constant dense<0.000000e+00> : vector<8x128xf32>
    %14 = tpu.matmul %12, %13, %cst_15 {dimension_numbers = #tpu.dot_dimension_numbers<[1], [0], [0], [1], [0, 0, 1, 1], [], []>} : vector<8x64xf32>, vector<64x128xf32>, vector<8x128xf32> -> vector<8x128xf32>
    %15 = arith.addf %11, %14 : vector<8x128xf32>
    %c0_16 = arith.constant 0 : index
    %c0_17 = arith.constant 0 : index
    %16 = vector.load %arg8[%c0_16, %c0_17] : memref<1x128xf32, #tpu.memory_space<vmem>>, vector<1x128xf32>
    %17 = vector.broadcast %16 : vector<1x128xf32> to vector<8x128xf32>
    %18 = arith.addf %15, %17 : vector<8x128xf32>
    %cst_18 = arith.constant 0.00999999977 : f32
    %19 = vector.broadcast %cst_18 : f32 to vector<8x128xf32>
    %20 = arith.mulf %19, %18 : vector<8x128xf32>
    %21 = arith.maximumf %18, %20 : vector<8x128xf32>
    %22 = tpu.iota {dimensions = array<i32: 1>} : vector<1x128xi32>
    %c64_i32 = arith.constant 64 : i32
    %23 = vector.broadcast %c64_i32 : i32 to vector<1x128xi32>
    %24 = arith.cmpi slt, %22, %23 : vector<1x128xi32>
    %25 = vector.shape_cast %24 : vector<1x128xi1> to vector<1x128xi1>
    %26 = vector.broadcast %25 : vector<1x128xi1> to vector<8x128xi1>
    %27 = arith.select %26, %21, %18 : vector<8x128xi1>, vector<8x128xf32>
    %28 = arith.mulf %8, %27 : vector<8x128xf32>
    %cst_19 = arith.constant dense<0.000000e+00> : vector<8xf32>
    %29 = vector.multi_reduction <add>, %28, %cst_19 [1] : vector<8x128xf32> to vector<8xf32>
    %30 = vector.shape_cast %29 : vector<8xf32> to vector<8x1xf32>
    %c0_20 = arith.constant 0 : index
    %c0_21 = arith.constant 0 : index
    %31 = memref.load %arg9[%c0_20, %c0_21] : memref<1x1xf32, #tpu.memory_space<smem>>
    %32 = vector.broadcast %31 : f32 to vector<8x1xf32>
    %33 = arith.addf %30, %32 : vector<8x1xf32>
    %c0_22 = arith.constant 0 : index
    %c0_23 = arith.constant 0 : index
    %34 = vector.load %arg10[%c0_22, %c0_23] : memref<8x1xf32, #tpu.memory_space<vmem>>, vector<8x1xf32>
    tpu.vector_store %arg10[%c0_22, %c0_23], %33 {strides = array<i32>} : memref<8x1xf32, #tpu.memory_space<vmem>>, vector<8x1xf32>,
    return
  }
  func.func @transform_0(%arg0: i32) -> (i32, i32) {
    %c0_i32 = arith.constant 0 : i32
    %c0_i32_0 = arith.constant 0 : i32
    return %arg0, %c0_i32 : i32, i32
  }
  func.func @transform_1(%arg0: i32) -> (i32, i32) {
    %c0_i32 = arith.constant 0 : i32
    %c0_i32_0 = arith.constant 0 : i32
    return %arg0, %c0_i32 : i32, i32
  }
  func.func @transform_2(%arg0: i32) -> (i32, i32) {
    %c0_i32 = arith.constant 0 : i32
    %c0_i32_0 = arith.constant 0 : i32
    return %arg0, %c0_i32 : i32, i32
  }
  func.func @transform_3(%arg0: i32) -> (i32, i32) {
    %c0_i32 = arith.constant 0 : i32
    %c0_i32_0 = arith.constant 0 : i32
    %c0_i32_1 = arith.constant 0 : i32
    return %c0_i32, %c0_i32_0 : i32, i32
  }
  func.func @transform_4(%arg0: i32) -> (i32, i32) {
    %c0_i32 = arith.constant 0 : i32
    %c0_i32_0 = arith.constant 0 : i32
    %c0_i32_1 = arith.constant 0 : i32
    return %c0_i32, %c0_i32_0 : i32, i32
  }
  func.func @transform_5(%arg0: i32) -> (i32, i32) {
    %c0_i32 = arith.constant 0 : i32
    %c0_i32_0 = arith.constant 0 : i32
    %c0_i32_1 = arith.constant 0 : i32
    return %c0_i32, %c0_i32_0 : i32, i32
  }
  func.func @transform_6(%arg0: i32) -> (i32, i32) {
    %c0_i32 = arith.constant 0 : i32
    %c0_i32_0 = arith.constant 0 : i32
    %c0_i32_1 = arith.constant 0 : i32
    return %c0_i32, %c0_i32_0 : i32, i32
  }
  func.func @transform_7(%arg0: i32) -> (i32, i32) {
    %c0_i32 = arith.constant 0 : i32
    %c0_i32_0 = arith.constant 0 : i32
    %c0_i32_1 = arith.constant 0 : i32
    return %c0_i32, %c0_i32_0 : i32, i32
  }
  func.func @transform_8(%arg0: i32) -> (i32, i32) {
    %c0_i32 = arith.constant 0 : i32
    %c0_i32_0 = arith.constant 0 : i32
    %c0_i32_1 = arith.constant 0 : i32
    return %c0_i32, %c0_i32_0 : i32, i32
  }
  func.func @transform_9(%arg0: i32) -> (i32, i32) {
    %c0_i32 = arith.constant 0 : i32
    %c0_i32_0 = arith.constant 0 : i32
    return %arg0, %c0_i32 : i32, i32
  }
}

</mosaic_0001>

<bundles_post_ra>
// kernel: mi_price_regression_v2_forward.1
= control target key start
LH: loop header
LB: loop body
LE: loop exit
PB: predicated region body
PF: predicated region fallthrough
CT: control target
= control target key end

     0   :  { %v374_v0 = vmov 0.0   ;;  %vm45_vm0 = vcmask 261120   ;;  %vm375_vm1 = vmmov 0   ;;  %vm208_vm2 = vcmask 195584   ;;  %s495_s3 = inlined_call_operand.vmem [shape: f32[32,128], index: 3, kind: input, shape index: {}]   ;;  %s496_s5 = inlined_call_operand.vmem [shape: f32[64,128], index: 5, kind: input, shape index: {}]   ;;  %s497_s0 = inlined_call_operand.vmem [shape: f32[8,32], index: 0, kind: input, shape index: {}]   ;;  %s498_s4 = inlined_call_operand.vmem [shape: f32[24,128], index: 4, kind: input, shape index: {}]   ;;  %s499_s1 = inlined_call_operand.vmem [shape: f32[8,24], index: 1, kind: input, shape index: {}]   ;;  %s500_s2 = inlined_call_operand.vmem [shape: f32[8,64], index: 2, kind: input, shape index: {}]   ;;  %s501_s6 = inlined_call_operand.vmem [shape: f32[1,128], index: 6, kind: input, shape index: {}]   ;;  %s502_s7 = inlined_call_operand.vmem [shape: f32[1,128], index: 7, kind: input, shape index: {}]   ;;  %s503_s8 = inlined_call_operand.<no memory space> [shape: f32[1,1], index: 8, kind: input, shape index: {}]   ;;  %s504_s9 = inlined_call_operand.vmem [shape: f32[8,1], index: 9, kind: output, shape index: {}]  }
   0x1   :  { %333 = vmatprep.subr.mxu0 %v374_v0  ;;  %344 = vmatprep.subr.mxu1 %v374_v0  ;;  %v37_v1 = vld [vmem:[%s495_s3 + $0x18] sm:$0xff]  ;;  %v36_v3 = vld [vmem:[%s495_s3 + $0x10] sm:$0xff]  ;;  %v35_v5 = vld [vmem:[%s495_s3 + $0x8] sm:$0xff]  ;;  %vm134_vm3 = vcmask 523264   ;;  %v292_v23 = vlaneseq  ;;  %v302_v38 = vstv %s503_s8  ;;  %vm304_vm5 = vcmask 7168  }
   0x2   :  { %v133_v2 = vld [vmem:[%s496_s5 + $0x38] sm:$0xff]  ;;  %334 = vmatpush3.msra.mxu0 %v37_v1  ;;  %v132_v4 = vld [vmem:[%s496_s5 + $0x30] sm:$0xff]  ;;  %v131_v6 = vld [vmem:[%s496_s5 + $0x28] sm:$0xff]  ;;  %341 = vmatprep.mubr.msk.f32.mxu0 %vm375_vm1, %v374_v0 }
   0x3   :  { %345 = vmatpush3.msra.mxu1 %v133_v2  ;;  %335 = vmatprep.subr.mxu0 %v374_v0  ;;  %v34_v7 = vld [vmem:[%s495_s3] sm:$0xff]  ;;  %v129_v10 = vld [vmem:[%s496_s5 + $0x18] sm:$0xff]  ;;  %v124_v11 = vld [vmem:[%s498_s4 + $0x10] sm:$0xff]  ;;  %v293_v30 = vand.u32 127, %v292_v23 }
   0x4   :  { %346 = vmatprep.subr.mxu1 %v374_v0  ;;  %336 = vmatpush3.msra.mxu0 %v36_v3  ;;  %v130_v8 = vld [vmem:[%s496_s5 + $0x20] sm:$0xff]  ;;  %v128_v12 = vld [vmem:[%s496_s5 + $0x10] sm:$0xff]  ;;  %v123_v13 = vld [vmem:[%s498_s4 + $0x8] sm:$0xff] }
   0x5   :  { %347 = vmatpush3.msra.mxu1 %v132_v4  ;;  %337 = vmatprep.subr.mxu0 %v374_v0  ;;  %v33_v9 = vld [vmem:[%s497_s0] sm:$0xff]  ;;  %v127_v14 = vld [vmem:[%s496_s5 + $0x8] sm:$0xff]  ;;  %vm294_vm4 = vcmp.lt.s32.totalorder %v293_v30, 64 }
   0x6   :  { %348 = vmatprep.subr.mxu1 %v374_v0  ;;  %338 = vmatpush3.msra.mxu0 %v35_v5  ;;  %v122_v15 = vld [vmem:[%s498_s4] sm:$0xff] }
   0x7   :  { %349 = vmatpush3.msra.mxu1 %v131_v6  ;;  %339 = vmatprep.subr.mxu0 %v374_v0  ;;  %v121_v16 = vld [vmem:[%s499_s1] sm:$0xff] }
   0x8   :  { %350 = vmatprep.subr.mxu1 %v374_v0  ;;  %340 = vmatpush3.msra.mxu0 %v34_v7  ;;  %v126_v17 = vld [vmem:[%s496_s5] sm:$0xff] }
   0x9   :  { %351 = vmatpush3.msra.mxu1 %v130_v8  ;;  %363 = vmatprep.subr.mxu0 %v374_v0  ;;  %v125_v18 = vld [vmem:[%s500_s2] sm:$0xff] }
   0xa   :  { %352 = vmatprep.subr.mxu1 %v374_v0  ;;  %342 = vmatmul.mubr.msk.f32.vlgmr.msra.gmra.mxu0 %vm45_vm0, %v33_v9  ;;  %v310_v21 = vld [vmem:[%s501_s6] ss:$0 sm:$0xff] }
   0xb   :  { %353 = vmatpush3.msra.mxu1 %v129_v10  ;;  %364 = vmatpush3.msra.mxu0 %v124_v11  ;;  %v314_v26 = vld [vmem:[%s502_s7] ss:$0 sm:$0xff] }
   0xc   :  { %354 = vmatprep.subr.mxu1 %v374_v0  ;;  %365 = vmatprep.subr.mxu0 %v374_v0 }
   0xd   :  { %355 = vmatpush3.msra.mxu1 %v128_v12  ;;  %366 = vmatpush3.msra.mxu0 %v123_v13 }
   0xe   :  { %356 = vmatprep.subr.mxu1 %v374_v0  ;;  %367 = vmatprep.subr.mxu0 %v374_v0 }
   0xf   :  { %357 = vmatpush3.msra.mxu1 %v127_v14  ;;  %368 = vmatpush3.msra.mxu0 %v122_v15 }
  0x10   :  { %369 = vmatprep.mubr.msk.f32.mxu0 %vm375_vm1, %v374_v0  ;;  %358 = vmatprep.subr.mxu1 %v374_v0 }
  0x11   :  { %370 = vmatmul.mubr.msk.f32.vlgmr.msra.gmra.mxu0 %vm208_vm2, %v121_v16  ;;  %359 = vmatpush3.msra.mxu1 %v126_v17 }
  0x12   :  { %360 = vmatprep.mubr.msk.f32.mxu1 %vm375_vm1, %v374_v0 }
  0x13   :  { %361 = vmatmul.mubr.msk.f32.vlgmr.msra.gmra.mxu1 %vm134_vm3, %v125_v18 }
  0xca   :  { %v115_v19 = vpop.f32.mrf.mxu0 }
  0xcb   :  { %v116_v24 = vadd.f32 %v310_v21, %v115_v19 }
  0xcc   :  { %v343_v20 = vpop.f32.mrf.mxu0 }
  0xcd   :  { %v119_v32 = vmul.f32 0.01, %v116_v24 }
  0xcf   :  { %v120_v35 = vmax.f32 %v116_v24, %v119_v32 }
  0xd1   :  { %v278_v22 = vpop.f32.mrf.mxu0 }
  0xd3   :  { %v204_v25 = vpop.f32.mrf.mxu1  ;;  %v371_v27 = vpop.f32.mrf.mxu0 }
  0xd4   :  { %v279_v28 = vadd.f32 %v278_v22, %v204_v25 }
  0xd5   :  { %v362_v29 = vpop.f32.mrf.mxu1 }
  0xd6   :  { %v289_v31 = vadd.f32 %v314_v26, %v279_v28 }
  0xd8   :  { %v290_v33 = vmul.f32 0.01, %v289_v31 }
  0xda   :  { %v291_v34 = vmax.f32 %v289_v31, %v290_v33 }
  0xdc   :  { %v297_v36 = vsel %vm294_vm4, %v291_v34, %v289_v31 }
  0xdd   :  { %v298_v37 = vmul.f32 %v297_v36, %v120_v35 }
  0xdf   :  { %299 = vadd.xlane.f32.xlu0 %v298_v37 }
 0x168   :  { %v300_v39 = vpop.xlane.xlu0 %299 }
 0x169   :  { %v303_v40 = vadd.f32 %v302_v38, %v300_v39 }
 0x16b   :  { %305 = vst.msk [vmem:[%s504_s9] sm:$0xff] %vm304_vm5, %v303_v40 }

</bundles_post_ra>
